<compile_context>
chip_gen: v5e
topology: v5e:2x2
jax: 0.10.0
libtpu: 0.0.40
codegen_flags: <defaults>
</compile_context>

<pallas_src>
import jax
import jax.numpy as jnp
from jax.experimental import pallas as pl
from jax.experimental.pallas import tpu as pltpu

_LANE = 128  # vreg lane width; batch lives on lanes in this kernel


def _round_up(x, m):
    return ((x + m - 1) // m) * m


def _make_mlp_kernel(num_layers):
    """Whole-MLP kernel on one batch tile (features on sublanes, batch on lanes).

    refs = (x_ref, w1, b1, w2, b2, ..., wL, bL, o_ref)
      x_ref : (in_features, bm) f32
      wi    : (fan_out_i, fan_in_i) f32      bi : (fan_out_i, 1) f32
      o_ref : (out_features, bm)
    """

    def kernel(*refs):
        x_ref = refs[0]
        o_ref = refs[-1]
        param_refs = refs[1:-1]

        h = x_ref[...]                                   # (in, bm) f32
        for li in range(num_layers):
            w = param_refs[2 * li][...]                  # (fo, fi)
            b = param_refs[2 * li + 1][...]              # (fo, 1) -> lane broadcast
            h = jnp.dot(w, h, preferred_element_type=jnp.float32) + b
            if li != num_layers - 1:                     # last Linear has no tanh
                h = jnp.tanh(h)
        o_ref[...] = h.astype(o_ref.dtype)

    return kernel


def fcblock_forward(x, params, *, block_m=4096):
    """Run the FCBlock forward pass with a Pallas kernel.

    x:      (N, in_features) float32
    params: list of (W, b) in PyTorch nn.Linear layout:
            W: (fan_out, fan_in), b: (fan_out, 1)
    Returns (N, out_features) float32.
    """
    n, in_features = x.shape
    out_features = params[-1][0].shape[0]
    num_layers = len(params)

    # --- batch tiling: batch is the lane (last) dim, so tiles are 128-multiples.
    n_128 = _round_up(max(n, 1), _LANE)
    bm = min(_round_up(block_m, _LANE), n_128)
    # Prefer >= 2 grid steps so the "parallel" batch axis can shard across both
    # TensorCores on v7x (a single-step grid leaves one TC idle).
    if bm == n_128 and n_128 >= 2 * _LANE:
        bm = max(_LANE, (n_128 // 2 // _LANE) * _LANE)
    n_pad = _round_up(n_128, bm)

    # Transposed activations: (in_features, n_pad).  Only the real feature width
    # (3 rows) is read from HBM; zero-padded batch columns cannot contaminate
    # real columns (each batch column is independent) and are sliced off below.
    x_t = x.T
    if n_pad != n:
        x_t = jnp.pad(x_t, ((0, 0), (0, n_pad - n)))

    # x tile: second-minor dim equals the full array dim (legal), lane dim = bm.
    in_specs = [pl.BlockSpec((in_features, bm), lambda i: (0, i))]
    flat_params = []
    for w, b in params:
        fo, fi = w.shape
        # Whole-array blocks with constant index_map -> fetched once, stay
        # VMEM-resident for the entire grid (they are tiny: <2 KiB each).
        in_specs.append(pl.BlockSpec((fo, fi), lambda i: (0, 0)))
        in_specs.append(pl.BlockSpec((fo, 1), lambda i: (0, 0)))
        flat_params.extend([w, b])

    # Lane-dense output slab (out_features rows, batch on lanes).
    out_spec = pl.BlockSpec((out_features, bm), lambda i: (0, i))

    out_t = pl.pallas_call(
        _make_mlp_kernel(num_layers),
        out_shape=jax.ShapeDtypeStruct((out_features, n_pad), x.dtype),
        grid_spec=pltpu.PrefetchScalarGridSpec(
            num_scalar_prefetch=0,
            grid=(n_pad // bm,),
            in_specs=in_specs,
            out_specs=out_spec,
        ),
        compiler_params=pltpu.CompilerParams(
            dimension_semantics=("parallel",),
            vmem_limit_bytes=32 * 1024 * 1024,
        ),
    )(x_t, *flat_params)

    # (out_features, n) -> (n, out_features); for out_features==1 this is a
    # free reshape (same row-major layout).
    return out_t[:, :n].T


def init_fcblock_params(key, in_features=3, hidden_features=20,
                        num_hidden_layers=3, out_features=1):
    """Deterministic parameter init mirroring FCBlock.__init__ shapes.

    Weights: xavier_normal (std = sqrt(2/(fan_in+fan_out))), PyTorch layout
             (fan_out, fan_in).
    Biases:  PyTorch Linear default, uniform(-1/sqrt(fan_in), 1/sqrt(fan_in)),
             stored as (fan_out, 1) for lane-broadcast inside the kernel.
    """
    dims = ([in_features] + [hidden_features] * (num_hidden_layers + 1)
            + [out_features])
    params = []
    for fan_in, fan_out in zip(dims[:-1], dims[1:]):
        key, kw, kb = jax.random.split(key, 3)
        std = (2.0 / (fan_in + fan_out)) ** 0.5
        w = std * jax.random.normal(kw, (fan_out, fan_in), dtype=jnp.float32)
        bound = 1.0 / (fan_in ** 0.5)
        b = jax.random.uniform(kb, (fan_out, 1), dtype=jnp.float32,
                               minval=-bound, maxval=bound)
        params.append((w, b))
    return params


def fcblock_reference(x, params):
    """Plain-JAX reference of the same forward pass (PyTorch Linear semantics)."""
    h = x
    for li, (w, b) in enumerate(params):
        h = h @ w.T + b[:, 0]
        if li != len(params) - 1:
            h = jnp.tanh(h)
    return h


if __name__ == "__main__":
    key = jax.random.PRNGKey(0)
    k_param, k_x1, k_x2 = jax.random.split(key, 3)

    in_features, hidden_features, num_hidden_layers, out_features = 3, 20, 3, 1

    params = init_fcblock_params(
        k_param,
        in_features=in_features,
        hidden_features=hidden_features,
        num_hidden_layers=num_hidden_layers,
        out_features=out_features,
    )

    fwd = jax.jit(fcblock_forward, static_argnames=("block_m",))

    # Case 1: tiny batch -> single 128-column tile, single grid step.
    x_small = jax.random.normal(k_x1, (16, in_features), dtype=jnp.float32)
    out_small = jax.block_until_ready(fwd(x_small, params))
    ref_small = fcblock_reference(x_small, params)
    assert out_small.shape == (16, out_features), out_small.shape
    assert jnp.allclose(out_small, ref_small, atol=1e-5, rtol=1e-5), (
        "Pallas output mismatch vs JAX reference (small batch)"
    )

    # Case 2: ragged batch -> batch zero-padding + 2-step parallel grid
    # (exercises megacore sharding path and padded-tail correctness).
    x_big = jax.random.normal(k_x2, (300, in_features), dtype=jnp.float32)
    out_big = jax.block_until_ready(fwd(x_big, params, block_m=256))
    ref_big = fcblock_reference(x_big, params)
    assert out_big.shape == (300, out_features), out_big.shape
    assert jnp.allclose(out_big, ref_big, atol=1e-5, rtol=1e-5), (
        "Pallas output mismatch vs JAX reference (padded batch)"
    )

    print("KERNEL_OK")
</pallas_src>

<mosaic_0001>
module attributes {stable_mosaic.version = 11 : i64} {
  func.func @kernel(%arg0: i32, %arg1: memref<3x128xf32, #tpu.memory_space<vmem>>, %arg2: memref<20x3xf32, #tpu.memory_space<vmem>>, %arg3: memref<20x1xf32, #tpu.memory_space<vmem>>, %arg4: memref<20x20xf32, #tpu.memory_space<vmem>>, %arg5: memref<20x1xf32, #tpu.memory_space<vmem>>, %arg6: memref<20x20xf32, #tpu.memory_space<vmem>>, %arg7: memref<20x1xf32, #tpu.memory_space<vmem>>, %arg8: memref<20x20xf32, #tpu.memory_space<vmem>>, %arg9: memref<20x1xf32, #tpu.memory_space<vmem>>, %arg10: memref<1x20xf32, #tpu.memory_space<vmem>>, %arg11: memref<1x1xf32, #tpu.memory_space<vmem>>, %arg12: memref<1x128xf32, #tpu.memory_space<vmem>>) attributes {dimension_semantics = [#tpu.dimension_semantics<parallel>], iteration_bounds = array<i64: 1>, scalar_prefetch = 0 : i64, scratch_operands = 0 : i64, tpu.core_type = #tpu.core_type<tc>, window_params = [{transform_indices = @transform_0, window_bounds = array<i64: 3, 128>}, {pipeline_mode = #tpu.pipeline_mode<synchronous>, transform_indices = @transform_1, window_bounds = array<i64: 20, 3>}, {pipeline_mode = #tpu.pipeline_mode<synchronous>, transform_indices = @transform_2, window_bounds = array<i64: 20, 1>}, {pipeline_mode = #tpu.pipeline_mode<synchronous>, transform_indices = @transform_3, window_bounds = array<i64: 20, 20>}, {pipeline_mode = #tpu.pipeline_mode<synchronous>, transform_indices = @transform_4, window_bounds = array<i64: 20, 1>}, {pipeline_mode = #tpu.pipeline_mode<synchronous>, transform_indices = @transform_5, window_bounds = array<i64: 20, 20>}, {pipeline_mode = #tpu.pipeline_mode<synchronous>, transform_indices = @transform_6, window_bounds = array<i64: 20, 1>}, {pipeline_mode = #tpu.pipeline_mode<synchronous>, transform_indices = @transform_7, window_bounds = array<i64: 20, 20>}, {pipeline_mode = #tpu.pipeline_mode<synchronous>, transform_indices = @transform_8, window_bounds = array<i64: 20, 1>}, {pipeline_mode = #tpu.pipeline_mode<synchronous>, transform_indices = @transform_9, window_bounds = array<i64: 1, 20>}, {pipeline_mode = #tpu.pipeline_mode<synchronous>, transform_indices = @transform_10, window_bounds = array<i64: 1, 1>}, {transform_indices = @transform_11, window_bounds = array<i64: 1, 128>}]} {
    %c0 = arith.constant 0 : index
    %c0_0 = arith.constant 0 : index
    %0 = vector.load %arg1[%c0, %c0_0] : memref<3x128xf32, #tpu.memory_space<vmem>>, vector<3x128xf32>
    %c0_1 = arith.constant 0 : index
    %c0_2 = arith.constant 0 : index
    %1 = vector.load %arg2[%c0_1, %c0_2] : memref<20x3xf32, #tpu.memory_space<vmem>>, vector<20x3xf32>
    %c0_3 = arith.constant 0 : index
    %c0_4 = arith.constant 0 : index
    %2 = vector.load %arg3[%c0_3, %c0_4] : memref<20x1xf32, #tpu.memory_space<vmem>>, vector<20x1xf32>
    %cst = arith.constant dense<0.000000e+00> : vector<20x128xf32>
    %3 = tpu.matmul %1, %0, %cst {dimension_numbers = #tpu.dot_dimension_numbers<[1], [0], [0], [1], [0, 0, 1, 1], [], []>} : vector<20x3xf32>, vector<3x128xf32>, vector<20x128xf32> -> vector<20x128xf32>
    %4 = vector.broadcast %2 : vector<20x1xf32> to vector<20x128xf32>
    %5 = arith.addf %3, %4 : vector<20x128xf32>
    %6 = math.tanh %5 : vector<20x128xf32>
    %c0_5 = arith.constant 0 : index
    %c0_6 = arith.constant 0 : index
    %7 = vector.load %arg4[%c0_5, %c0_6] : memref<20x20xf32, #tpu.memory_space<vmem>>, vector<20x20xf32>
    %c0_7 = arith.constant 0 : index
    %c0_8 = arith.constant 0 : index
    %8 = vector.load %arg5[%c0_7, %c0_8] : memref<20x1xf32, #tpu.memory_space<vmem>>, vector<20x1xf32>
    %cst_9 = arith.constant dense<0.000000e+00> : vector<20x128xf32>
    %9 = tpu.matmul %7, %6, %cst_9 {dimension_numbers = #tpu.dot_dimension_numbers<[1], [0], [0], [1], [0, 0, 1, 1], [], []>} : vector<20x20xf32>, vector<20x128xf32>, vector<20x128xf32> -> vector<20x128xf32>
    %10 = vector.broadcast %8 : vector<20x1xf32> to vector<20x128xf32>
    %11 = arith.addf %9, %10 : vector<20x128xf32>
    %12 = math.tanh %11 : vector<20x128xf32>
    %c0_10 = arith.constant 0 : index
    %c0_11 = arith.constant 0 : index
    %13 = vector.load %arg6[%c0_10, %c0_11] : memref<20x20xf32, #tpu.memory_space<vmem>>, vector<20x20xf32>
    %c0_12 = arith.constant 0 : index
    %c0_13 = arith.constant 0 : index
    %14 = vector.load %arg7[%c0_12, %c0_13] : memref<20x1xf32, #tpu.memory_space<vmem>>, vector<20x1xf32>
    %cst_14 = arith.constant dense<0.000000e+00> : vector<20x128xf32>
    %15 = tpu.matmul %13, %12, %cst_14 {dimension_numbers = #tpu.dot_dimension_numbers<[1], [0], [0], [1], [0, 0, 1, 1], [], []>} : vector<20x20xf32>, vector<20x128xf32>, vector<20x128xf32> -> vector<20x128xf32>
    %16 = vector.broadcast %14 : vector<20x1xf32> to vector<20x128xf32>
    %17 = arith.addf %15, %16 : vector<20x128xf32>
    %18 = math.tanh %17 : vector<20x128xf32>
    %c0_15 = arith.constant 0 : index
    %c0_16 = arith.constant 0 : index
    %19 = vector.load %arg8[%c0_15, %c0_16] : memref<20x20xf32, #tpu.memory_space<vmem>>, vector<20x20xf32>
    %c0_17 = arith.constant 0 : index
    %c0_18 = arith.constant 0 : index
    %20 = vector.load %arg9[%c0_17, %c0_18] : memref<20x1xf32, #tpu.memory_space<vmem>>, vector<20x1xf32>
    %cst_19 = arith.constant dense<0.000000e+00> : vector<20x128xf32>
    %21 = tpu.matmul %19, %18, %cst_19 {dimension_numbers = #tpu.dot_dimension_numbers<[1], [0], [0], [1], [0, 0, 1, 1], [], []>} : vector<20x20xf32>, vector<20x128xf32>, vector<20x128xf32> -> vector<20x128xf32>
    %22 = vector.broadcast %20 : vector<20x1xf32> to vector<20x128xf32>
    %23 = arith.addf %21, %22 : vector<20x128xf32>
    %24 = math.tanh %23 : vector<20x128xf32>
    %c0_20 = arith.constant 0 : index
    %c0_21 = arith.constant 0 : index
    %25 = vector.load %arg10[%c0_20, %c0_21] : memref<1x20xf32, #tpu.memory_space<vmem>>, vector<1x20xf32>
    %c0_22 = arith.constant 0 : index
    %c0_23 = arith.constant 0 : index
    %26 = vector.load %arg11[%c0_22, %c0_23] : memref<1x1xf32, #tpu.memory_space<vmem>>, vector<1x1xf32>
    %cst_24 = arith.constant dense<0.000000e+00> : vector<1x128xf32>
    %27 = tpu.matmul %25, %24, %cst_24 {dimension_numbers = #tpu.dot_dimension_numbers<[1], [0], [0], [1], [0, 0, 1, 1], [], []>} : vector<1x20xf32>, vector<20x128xf32>, vector<1x128xf32> -> vector<1x128xf32>
    %28 = vector.broadcast %26 : vector<1x1xf32> to vector<1x128xf32>
    %29 = arith.addf %27, %28 : vector<1x128xf32>
    %c0_25 = arith.constant 0 : index
    %c0_26 = arith.constant 0 : index
    %30 = vector.load %arg12[%c0_25, %c0_26] : memref<1x128xf32, #tpu.memory_space<vmem>>, vector<1x128xf32>
    tpu.vector_store %arg12[%c0_25, %c0_26], %29 {strides = array<i32>} : memref<1x128xf32, #tpu.memory_space<vmem>>, vector<1x128xf32>,
    return
  }
  func.func @transform_0(%arg0: i32) -> (i32, i32) {
    %c0_i32 = arith.constant 0 : i32
    %c0_i32_0 = arith.constant 0 : i32
    return %c0_i32, %arg0 : i32, i32
  }
  func.func @transform_1(%arg0: i32) -> (i32, i32) {
    %c0_i32 = arith.constant 0 : i32
    %c0_i32_0 = arith.constant 0 : i32
    %c0_i32_1 = arith.constant 0 : i32
    return %c0_i32, %c0_i32_0 : i32, i32
  }
  func.func @transform_2(%arg0: i32) -> (i32, i32) {
    %c0_i32 = arith.constant 0 : i32
    %c0_i32_0 = arith.constant 0 : i32
    %c0_i32_1 = arith.constant 0 : i32
    return %c0_i32, %c0_i32_0 : i32, i32
  }
  func.func @transform_3(%arg0: i32) -> (i32, i32) {
    %c0_i32 = arith.constant 0 : i32
    %c0_i32_0 = arith.constant 0 : i32
    %c0_i32_1 = arith.constant 0 : i32
    return %c0_i32, %c0_i32_0 : i32, i32
  }
  func.func @transform_4(%arg0: i32) -> (i32, i32) {
    %c0_i32 = arith.constant 0 : i32
    %c0_i32_0 = arith.constant 0 : i32
    %c0_i32_1 = arith.constant 0 : i32
    return %c0_i32, %c0_i32_0 : i32, i32
  }
  func.func @transform_5(%arg0: i32) -> (i32, i32) {
    %c0_i32 = arith.constant 0 : i32
    %c0_i32_0 = arith.constant 0 : i32
    %c0_i32_1 = arith.constant 0 : i32
    return %c0_i32, %c0_i32_0 : i32, i32
  }
  func.func @transform_6(%arg0: i32) -> (i32, i32) {
    %c0_i32 = arith.constant 0 : i32
    %c0_i32_0 = arith.constant 0 : i32
    %c0_i32_1 = arith.constant 0 : i32
    return %c0_i32, %c0_i32_0 : i32, i32
  }
  func.func @transform_7(%arg0: i32) -> (i32, i32) {
    %c0_i32 = arith.constant 0 : i32
    %c0_i32_0 = arith.constant 0 : i32
    %c0_i32_1 = arith.constant 0 : i32
    return %c0_i32, %c0_i32_0 : i32, i32
  }
  func.func @transform_8(%arg0: i32) -> (i32, i32) {
    %c0_i32 = arith.constant 0 : i32
    %c0_i32_0 = arith.constant 0 : i32
    %c0_i32_1 = arith.constant 0 : i32
    return %c0_i32, %c0_i32_0 : i32, i32
  }
  func.func @transform_9(%arg0: i32) -> (i32, i32) {
    %c0_i32 = arith.constant 0 : i32
    %c0_i32_0 = arith.constant 0 : i32
    %c0_i32_1 = arith.constant 0 : i32
    return %c0_i32, %c0_i32_0 : i32, i32
  }
  func.func @transform_10(%arg0: i32) -> (i32, i32) {
    %c0_i32 = arith.constant 0 : i32
    %c0_i32_0 = arith.constant 0 : i32
    %c0_i32_1 = arith.constant 0 : i32
    return %c0_i32, %c0_i32_0 : i32, i32
  }
  func.func @transform_11(%arg0: i32) -> (i32, i32) {
    %c0_i32 = arith.constant 0 : i32
    %c0_i32_0 = arith.constant 0 : i32
    return %c0_i32, %arg0 : i32, i32
  }
}

</mosaic_0001>

<bundles_post_ra>
// kernel: fcblock_forward.1
= control target key start
LH: loop header
LB: loop body
LE: loop exit
PB: predicated region body
PF: predicated region fallthrough
CT: control target
= control target key end

     0   :  { %vm72_vm0 = vcmask 1042432   ;;  %vm62_vm1 = vcmask 23552   ;;  %v378_v0 = vmov 0   ;;  %vm136_vm2 = vcmask 1043456   ;;  %s540_s2 = inlined_call_operand.vmem [shape: f32[20,1], index: 2, kind: input, shape index: {}]   ;;  %s541_s0 = inlined_call_operand.vmem [shape: f32[3,128], index: 0, kind: input, shape index: {}]   ;;  %s542_s1 = inlined_call_operand.vmem [shape: f32[20,3], index: 1, kind: input, shape index: {}]   ;;  %s543_s10 = inlined_call_operand.<no memory space> [shape: f32[1,1], index: 10, kind: input, shape index: {}]   ;;  %s544_s4 = inlined_call_operand.vmem [shape: f32[20,1], index: 4, kind: input, shape index: {}]   ;;  %s545_s6 = inlined_call_operand.vmem [shape: f32[20,1], index: 6, kind: input, shape index: {}]   ;;  %s546_s8 = inlined_call_operand.vmem [shape: f32[20,1], index: 8, kind: input, shape index: {}]   ;;  %s547_s3 = inlined_call_operand.vmem [shape: f32[20,20], index: 3, kind: input, shape index: {}]   ;;  %s548_s5 = inlined_call_operand.vmem [shape: f32[20,20], index: 5, kind: input, shape index: {}]   ;;  %s549_s7 = inlined_call_operand.vmem [shape: f32[20,20], index: 7, kind: input, shape index: {}]   ;;  %s550_s9 = inlined_call_operand.vmem [shape: f32[1,20], index: 9, kind: input, shape index: {}]   ;;  %s551_s11 = inlined_call_operand.vmem [shape: f32[1,128], index: 11, kind: output, shape index: {}]  }
   0x1   :  { %351 = vset.pattern.permute.xlu0 %v378_v0  ;;  %v46_v1 = vld [vmem:[%s540_s2 + $0x10] sm:$0xf]  ;;  %v40_v2 = vld [vmem:[%s541_s0] sm:$0x7]  ;;  %352 = vset.pattern.permute.xlu1 %v378_v0  ;;  %v16_v4 = vstv %s543_s10  ;;  %v45_v6 = vld [vmem:[%s540_s2 + $0x8] sm:$0xff]  ;;  %vm126_vm3 = vcmask 162816  }
   0x2   :  { %v41_v3 = vld [vmem:[%s542_s1] sm:$0xff]  ;;  %59 = vperm.xlu0 %351, %v46_v1   ;;  %332 = vmatpush.msk.msra.mxu0 %vm72_vm0, %v40_v2  ;;  %17 = vst [vmem:[#allocation2] sm:$0x1] %v16_v4  ;;  %v42_v7 = vld [vmem:[%s542_s1 + $0x8] sm:$0xff]  ;;  %v110_v8 = vld [vmem:[%s544_s4 + $0x10] sm:$0xf] }
   0x3   :  { %v44_v5 = vld [vmem:[%s540_s2] sm:$0xff]  ;;  %333 = vmatmul.msk.f32.vlgmr.msra.gmra.mxu0 %vm62_vm1, %v41_v3  ;;  %353 = vset.pattern.permute.xlu2 %v378_v0  ;;  %v174_v9 = vld [vmem:[%s545_s6 + $0x10] sm:$0xf]  ;;  %v173_v11 = vld [vmem:[%s545_s6 + $0x8] sm:$0xff] }
   0x4   :  { %49 = vperm.xlu1 %352, %v44_v5   ;;  %v43_v10 = vld [vmem:[%s542_s1 + $0x10] sm:$0xf]  ;;  %v235_v13 = vld [vmem:[%s546_s8 + $0x8] sm:$0xff]  ;;  %v108_v25 = vld [vmem:[%s544_s4] sm:$0xff] }
   0x5   :  { %v236_v12 = vld [vmem:[%s546_s8 + $0x10] sm:$0xf]  ;;  %v109_v18 = vld [vmem:[%s544_s4 + $0x8] sm:$0xff]  ;;  %v105_v28 = vld [vmem:[%s547_s3] sm:$0xff] }
   0x6   :  { %118 = vperm.xlu2 %353, %v109_v18   ;;  %v172_v30 = vld [vmem:[%s545_s6] sm:$0xff]  ;;  %v106_v31 = vld [vmem:[%s547_s3 + $0x8] sm:$0xff]  ;;  %v107_v33 = vld [vmem:[%s547_s3 + $0x10] sm:$0xf] }
   0x7   :  { %v234_v32 = vld [vmem:[%s546_s8] sm:$0xff]  ;;  %v170_v47 = vld [vmem:[%s548_s5 + $0x8] sm:$0xff]  ;;  %v171_v48 = vld [vmem:[%s548_s5 + $0x10] sm:$0xf] }
   0x8   :  { %v169_v45 = vld [vmem:[%s548_s5] sm:$0xff]  ;;  %v232_v62 = vld [vmem:[%s549_s7 + $0x8] sm:$0xff]  ;;  %v233_v63 = vld [vmem:[%s549_s7 + $0x10] sm:$0xf] }
   0x9   :  { %v294_v14 = vld [vmem:[#allocation2] sm:$0x1] }
   0xa   :  { %54 = vperm.xlu0 %351, %v45_v6   ;;  %v231_v60 = vld [vmem:[%s549_s7] sm:$0xff] }
   0xb   :  { %334 = vmatmul.msk.f32.gmra.mxu0 %vm62_vm1, %v42_v7 }
   0xc   :  { %123 = vperm.xlu1 %352, %v110_v8  }
   0xe   :  { %113 = vperm.xlu2 %353, %v108_v25  }
  0x12   :  { %187 = vperm.xlu0 %351, %v174_v9  }
  0x13   :  { %335 = vmatmul.msk.f32.gmra.mxu0 %vm62_vm1, %v43_v10 }
  0x14   :  { %182 = vperm.xlu1 %352, %v173_v11   ;;  %v293_v11 = vld [vmem:[%s550_s9] sm:$0x1] }
  0x16   :  { %177 = vperm.xlu2 %353, %v172_v30  }
  0x1a   :  { %249 = vperm.xlu0 %351, %v236_v12  }
  0x1c   :  { %244 = vperm.xlu1 %352, %v235_v13  }
  0x1e   :  { %239 = vperm.xlu2 %353, %v234_v32  }
  0x22   :  { %297 = vperm.xlu0 %351, %v294_v14  }
  0x60   :  { %v119_v35 = vpop.permute.xlu2 %118 }
  0x68   :  { %v114_v41 = vpop.permute.xlu2 %113 }
  0x70   :  { %v178_v56 = vpop.permute.xlu2 %177 }
  0x74   :  { %v60_v16 = vpop.permute.xlu0 %59 }
  0x76   :  { %v50_v23 = vpop.permute.xlu1 %49 }
  0x78   :  { %v240_v7 = vpop.permute.xlu2 %239 }
  0x7c   :  { %v55_v19 = vpop.permute.xlu0 %54 }
  0x7e   :  { %v124_v37 = vpop.permute.xlu1 %123 }
  0x80   :  { %v93_v15 = vpop.f32.mrf.mxu0 }
  0x81   :  { %v94_v24 = vadd.f32 %v93_v15, %v50_v23 }
  0x84   :  { %v188_v51 = vpop.permute.xlu0 %187 }
  0x86   :  { %v183_v52 = vpop.permute.xlu1 %182 }
  0x88   :  { %v96_v17 = vpop.f32.mrf.mxu0 }
  0x89   :  { %v97_v21 = vadd.f32 %v96_v17, %v55_v19 }
  0x8c   :  { %v250_v2 = vpop.permute.xlu0 %249 }
  0x8e   :  { %v245_v3 = vpop.permute.xlu1 %244 }
  0x90   :  { %v99_v20 = vpop.f32.mrf.mxu0 }
  0x91   :  { %v100_v22 = vadd.f32 %v99_v20, %v60_v16 }
  0x93   :  { %354 = vtanh.f32 %v100_v22 }
  0x94   :  { %356 = vtanh.f32 %v97_v21  ;;  %v298_v13 = vpop.permute.xlu0 %297 }
  0x95   :  { %358 = vtanh.f32 %v94_v24  ;;  %v300_v14 = vperm.slane %v298_v13, 0 }
  0x99   :  { %v355_v26 = vpop.eup %354 }
  0x9a   :  { %336 = vmatpush.msk.msra.mxu1 %vm136_vm2, %v355_v26  ;;  %v357_v27 = vpop.eup %356 }
  0x9b   :  { %v359_v29 = vpop.eup %358 }
  0x9c   :  { %154 = vmatpush.msra.mxu1 %v357_v27 }
  0x9e   :  { %155 = vmatpush.msra.mxu1 %v359_v29 }
  0x9f   :  { %337 = vmatmul.msk.f32.vlgmr.msra.gmra.mxu1 %vm126_vm3, %v105_v28 }
  0xa7   :  { %338 = vmatmul.msk.f32.gmra.mxu1 %vm126_vm3, %v106_v31 }
  0xaf   :  { %339 = vmatmul.msk.f32.gmra.mxu1 %vm126_vm3, %v107_v33 }
 0x11c   :  { %v157_v34 = vpop.f32.mrf.mxu1 }
 0x11d   :  { %v158_v42 = vadd.f32 %v157_v34, %v114_v41 }
 0x124   :  { %v160_v36 = vpop.f32.mrf.mxu1 }
 0x125   :  { %v161_v39 = vadd.f32 %v160_v36, %v119_v35 }
 0x12c   :  { %v163_v38 = vpop.f32.mrf.mxu1 }
 0x12d   :  { %v164_v40 = vadd.f32 %v163_v38, %v124_v37 }
 0x12f   :  { %360 = vtanh.f32 %v164_v40 }
 0x130   :  { %362 = vtanh.f32 %v161_v39 }
 0x131   :  { %364 = vtanh.f32 %v158_v42 }
 0x135   :  { %v361_v43 = vpop.eup %360 }
 0x136   :  { %340 = vmatpush.msk.msra.mxu2 %vm136_vm2, %v361_v43  ;;  %v363_v44 = vpop.eup %362 }
 0x137   :  { %v365_v46 = vpop.eup %364 }
 0x138   :  { %216 = vmatpush.msra.mxu2 %v363_v44 }
 0x13a   :  { %217 = vmatpush.msra.mxu2 %v365_v46 }
 0x13b   :  { %341 = vmatmul.msk.f32.vlgmr.msra.gmra.mxu2 %vm126_vm3, %v169_v45 }
 0x143   :  { %342 = vmatmul.msk.f32.gmra.mxu2 %vm126_vm3, %v170_v47 }
 0x14b   :  { %343 = vmatmul.msk.f32.gmra.mxu2 %vm126_vm3, %v171_v48 }
 0x1be   :  { %v219_v49 = vpop.f32.mrf.mxu2 }
 0x1bf   :  { %v220_v57 = vadd.f32 %v219_v49, %v178_v56 }
 0x1c6   :  { %v222_v50 = vpop.f32.mrf.mxu2 }
 0x1c7   :  { %v223_v54 = vadd.f32 %v222_v50, %v183_v52 }
 0x1ce   :  { %v225_v53 = vpop.f32.mrf.mxu2 }
 0x1cf   :  { %v226_v55 = vadd.f32 %v225_v53, %v188_v51 }
 0x1d1   :  { %366 = vtanh.f32 %v226_v55 }
 0x1d2   :  { %368 = vtanh.f32 %v223_v54 }
 0x1d3   :  { %370 = vtanh.f32 %v220_v57 }
 0x1d7   :  { %v367_v58 = vpop.eup %366 }
 0x1d8   :  { %344 = vmatpush.msk.msra.mxu3 %vm136_vm2, %v367_v58  ;;  %v369_v59 = vpop.eup %368 }
 0x1d9   :  { %v371_v61 = vpop.eup %370 }
 0x1da   :  { %278 = vmatpush.msra.mxu3 %v369_v59 }
 0x1dc   :  { %279 = vmatpush.msra.mxu3 %v371_v61 }
 0x1dd   :  { %345 = vmatmul.msk.f32.vlgmr.msra.gmra.mxu3 %vm126_vm3, %v231_v60 }
 0x1e5   :  { %346 = vmatmul.msk.f32.gmra.mxu3 %vm126_vm3, %v232_v62 }
 0x1ed   :  { %347 = vmatmul.msk.f32.gmra.mxu3 %vm126_vm3, %v233_v63 }
 0x260   :  { %v281_v0 = vpop.f32.mrf.mxu3 }
 0x261   :  { %v282_v8 = vadd.f32 %v281_v0, %v240_v7 }
 0x268   :  { %v284_v1 = vpop.f32.mrf.mxu3 }
 0x269   :  { %v285_v5 = vadd.f32 %v284_v1, %v245_v3 }
 0x270   :  { %v287_v4 = vpop.f32.mrf.mxu3 }
 0x271   :  { %v288_v6 = vadd.f32 %v287_v4, %v250_v2 }
 0x273   :  { %372 = vtanh.f32 %v288_v6 }
 0x274   :  { %374 = vtanh.f32 %v285_v5 }
 0x275   :  { %376 = vtanh.f32 %v282_v8 }
 0x279   :  { %v373_v9 = vpop.eup %372 }
 0x27a   :  { %348 = vmatpush.msk.msrb.mxu0 %vm136_vm2, %v373_v9  ;;  %v375_v10 = vpop.eup %374 }
 0x27b   :  { %v377_v12 = vpop.eup %376 }
 0x27c   :  { %321 = vmatpush.msrb.mxu0 %v375_v10 }
 0x27e   :  { %322 = vmatpush.msrb.mxu0 %v377_v12 }
 0x27f   :  { %349 = vmatmul.msk.f32.vlgmr.msrb.gmra.mxu0 %vm126_vm3, %v293_v11 }
 0x2fc   :  { %v324_v15 = vpop.f32.mrf.mxu0 }
 0x2fd   :  { %v325_v16 = vadd.f32 %v324_v15, %v300_v14 }
 0x2ff   :  { %327 = vst [vmem:[%s551_s11] sm:$0x1] %v325_v16 }

</bundles_post_ra>
